<compile_context>
chip_gen: v7x
topology: tpu7x:2x2x1
jax: 0.10.0
libtpu: 0.0.40
codegen_flags: <defaults>
</compile_context>

<pallas_src>
from functools import partial

import numpy as np
import jax
import jax.numpy as jnp
from jax.experimental import pallas as pl
from jax.experimental.pallas import tpu as pltpu


# ----------------------------------------------------------------------------
# Pallas kernel: reduction over the psize row-offset axis + averaging.
# ----------------------------------------------------------------------------
def _fold_kernel(slab_ref, inv_ref, o_ref, acc_ref):
    # slab_ref : (1, 1, S, S)  row/col-placed, j-summed slab for (batch b, row i)
    # inv_ref  : (S, S)        1 / overlap-count image (resident, same block)
    # o_ref    : (1, S, S)     output image for batch b
    # acc_ref  : (S, S) f32    resident VMEM accumulator
    i = pl.program_id(1)

    @pl.when(i == 0)
    def _():
        acc_ref[...] = jnp.zeros_like(acc_ref)

    # Whole-tile, (8,128)-aligned add — no masked sublane RMW.
    acc_ref[...] += slab_ref[0, 0]

    @pl.when(i == pl.num_programs(1) - 1)
    def _():
        o_ref[0] = acc_ref[...] * inv_ref[...]


# ----------------------------------------------------------------------------
# Wrapper: layout plumbing (scatter + column pre-sum + row placement) + call.
# ----------------------------------------------------------------------------
def _expand_to_slabs(x, mask, psize, window_size, image_size):
    """(B, L, P2) -> (B, psize, S, S): row/col-placed, column(j)-pre-summed slabs."""
    B, L, P2 = x.shape
    W, S = window_size, image_size
    # mirrors `patch_set[:, mask] = x`
    grid = jnp.zeros((B, W * W, P2), x.dtype).at[:, mask, :].set(x)
    grid = grid.reshape(B, W, W, P2)                      # [b, u, v, i*psize+j]
    slabs = []
    for i in range(psize):
        row_sum = jnp.zeros((B, W, S), x.dtype)
        for j in range(psize):
            k = i * psize + j
            # place the W columns at [j, j+W) of an S-wide (lane-dense) slab
            row_sum = row_sum + jnp.pad(
                grid[..., k], ((0, 0), (0, 0), (j, S - W - j)))
        # place the W rows at [i, i+W) of an S-tall slab
        slabs.append(jnp.pad(row_sum, ((0, 0), (i, S - W - i), (0, 0))))
    return jnp.stack(slabs, axis=1)                       # (B, psize, S, S)


@partial(jax.jit, static_argnums=(3, 4, 5))
def patch2image_pallas(x, mask, inv_ave, image_size, psize, window_size):
    B, L, P2 = x.shape
    S, W = image_size, window_size
    slabs = _expand_to_slabs(x, mask, psize, W, S)        # (B, psize, S, S)

    # Advisory cost estimate: slabs read once, inv_ave fetched once (resident),
    # output written once.
    bytes_accessed = (slabs.size + inv_ave.size + B * S * S) * 4
    flops = B * psize * S * S + B * S * S

    out = pl.pallas_call(
        _fold_kernel,
        out_shape=jax.ShapeDtypeStruct((B, S, S), jnp.float32),
        grid_spec=pltpu.PrefetchScalarGridSpec(
            num_scalar_prefetch=0,
            grid=(B, psize),                              # reduction axis last
            in_specs=[
                # one (S, S) slab per (batch, row-offset) step; last two dims
                # equal the full array dims so (8,128) divisibility is satisfied
                # even for small test images.
                pl.BlockSpec((1, 1, S, S), lambda b, i: (b, i, 0, 0)),
                # 1/ave image: same block every step -> stays resident in VMEM.
                pl.BlockSpec((S, S), lambda b, i: (0, 0)),
            ],
            # Same output block across the reduction axis -> resident until the
            # last i step, written under pl.when(i == last).
            out_specs=pl.BlockSpec((1, S, S), lambda b, i: (b, 0, 0)),
            scratch_shapes=[pltpu.VMEM((S, S), jnp.float32)],
        ),
        compiler_params=pltpu.CompilerParams(
            dimension_semantics=("parallel", "arbitrary")),
        cost_estimate=pl.CostEstimate(
            flops=flops, transcendentals=0, bytes_accessed=bytes_accessed),
    )(slabs, inv_ave)

    # TODO(synk): for tiny images (S < 128) / tiny B, block several batches per
    # grid step (block (Bt, 1, S, S)) to amortize the ~0.35us per-step overhead;
    # for B == 1 on v7x, add a second "parallel" axis (output-row tiles) so both
    # TensorCores are used; optionally emit slabs as bf16 (accumulate in f32)
    # to halve HBM read traffic, and sweep pipeline_mode=pl.Buffered(3).
    return out.reshape(B, 1, S, S)


# ----------------------------------------------------------------------------
# Parameter setup (mirrors patch2image.__init__ / ave_mask_com), plain numpy.
# ----------------------------------------------------------------------------
def build_patch2image_params(image_size, psize, stride):
    W = image_size + 1 - psize
    mask2d = np.arange(W * W).reshape(W, W)
    cur = np.arange(0, W, stride)
    if cur[-1] != W - 1:
        cur = np.concatenate([cur, np.array([W - 1])])
    mask = mask2d[cur, :][:, cur].reshape(-1)                     # (L,)

    # overlap counts (== ave_mask_com)
    sel = np.zeros((W * W,), np.float32)
    sel[mask] = 1.0
    sel2d = sel.reshape(W, W)
    ave = np.zeros((image_size, image_size), np.float32)
    for i in range(psize):
        for j in range(psize):
            ave[i:i + W, j:j + W] += sel2d
    assert np.all(ave > 0), (
        "uncovered output pixels -> 1/ave undefined (stride > psize?)")
    inv_ave = (1.0 / ave).astype(np.float32)
    return jnp.asarray(mask), W, jnp.asarray(inv_ave)


# ----------------------------------------------------------------------------
# Pure-JAX reference (literal transcription of to_image / 'ave' mode).
# ----------------------------------------------------------------------------
def reference_forward(x, mask, psize, window_size, image_size):
    B, L, P2 = x.shape
    patch_set = jnp.zeros((B, window_size * window_size, P2), jnp.float32)
    patch_set = patch_set.at[:, mask].set(x)
    out = jnp.zeros((B, 1, image_size, image_size), jnp.float32)
    for i in range(psize):
        for j in range(psize):
            idx = i * psize + j
            temp = patch_set[:, :, idx].reshape(B, 1, window_size, window_size)
            out = out.at[:, :, i:i + window_size, j:j + window_size].add(temp)
    ave = jnp.zeros((window_size * window_size,), jnp.float32).at[mask].set(1.0)
    ave_img = jnp.zeros((image_size, image_size), jnp.float32)
    for i in range(psize):
        for j in range(psize):
            ave_img = ave_img.at[i:i + window_size, j:j + window_size].add(
                ave.reshape(window_size, window_size))
    return out / ave_img[None, None]


if __name__ == "__main__":
    # Small, forward-consistent shapes (image 16x16, 4x4 patches, stride 2).
    image_size, psize, stride = 16, 4, 2
    batch = 2

    mask, window_size, inv_ave = build_patch2image_params(image_size, psize, stride)
    L = int(mask.shape[0])               # 49 selected window positions
    P2 = psize * psize                   # 16 pixels per patch

    key = jax.random.PRNGKey(0)
    x = jax.random.normal(key, (batch, L, P2), dtype=jnp.float32)

    out = patch2image_pallas(x, mask, inv_ave, image_size, psize, window_size)
    out = jax.block_until_ready(out)

    ref = reference_forward(x, mask, psize, window_size, image_size)
    assert out.shape == (batch, 1, image_size, image_size)
    assert jnp.allclose(out, ref, atol=1e-5, rtol=1e-5), "mismatch vs reference"

    print("KERNEL_OK")
</pallas_src>

<mosaic_0001>
module attributes {stable_mosaic.version = 11 : i64} {
  func.func @_fold_kernel(%arg0: i32, %arg1: i32, %arg2: memref<1x1x16x16xf32, #tpu.memory_space<vmem>>, %arg3: memref<16x16xf32, #tpu.memory_space<vmem>>, %arg4: memref<1x16x16xf32, #tpu.memory_space<vmem>>, %arg5: memref<16x16xf32, #tpu.memory_space<vmem>>) attributes {dimension_semantics = [#tpu.dimension_semantics<parallel>, #tpu.dimension_semantics<arbitrary>], iteration_bounds = array<i64: 2, 4>, scalar_prefetch = 0 : i64, scratch_operands = 1 : i64, tpu.core_type = #tpu.core_type<tc>, window_params = [{transform_indices = @transform_0, window_bounds = array<i64: 1, 1, 16, 16>}, {pipeline_mode = #tpu.pipeline_mode<synchronous>, transform_indices = @transform_1, window_bounds = array<i64: 16, 16>}, {transform_indices = @transform_2, window_bounds = array<i64: 1, 16, 16>}]} {
    %c0_i32 = arith.constant 0 : i32
    %0 = arith.cmpi eq, %arg1, %c0_i32 : i32
    %1 = arith.extui %0 : i1 to i32
    %c0_i32_0 = arith.constant 0 : i32
    %2 = arith.cmpi ne, %1, %c0_i32_0 : i32
    scf.if %2 {
      %cst = arith.constant 0.000000e+00 : f32
      %11 = vector.broadcast %cst : f32 to vector<16x16xf32>
      %c0_9 = arith.constant 0 : index
      %c0_10 = arith.constant 0 : index
      %12 = vector.load %arg5[%c0_9, %c0_10] : memref<16x16xf32, #tpu.memory_space<vmem>>, vector<16x16xf32>
      tpu.vector_store %arg5[%c0_9, %c0_10], %11 {strides = array<i32>} : memref<16x16xf32, #tpu.memory_space<vmem>>, vector<16x16xf32>,
    } else {
    }
    %c0 = arith.constant 0 : index
    %c0_1 = arith.constant 0 : index
    %3 = vector.load %arg5[%c0, %c0_1] : memref<16x16xf32, #tpu.memory_space<vmem>>, vector<16x16xf32>
    %c0_2 = arith.constant 0 : index
    %c0_3 = arith.constant 0 : index
    %c0_4 = arith.constant 0 : index
    %c0_5 = arith.constant 0 : index
    %4 = vector.load %arg2[%c0_2, %c0_3, %c0_4, %c0_5] : memref<1x1x16x16xf32, #tpu.memory_space<vmem>>, vector<1x1x16x16xf32>
    %5 = vector.shape_cast %4 : vector<1x1x16x16xf32> to vector<16x16xf32>
    %6 = arith.addf %3, %5 : vector<16x16xf32>
    %c0_6 = arith.constant 0 : index
    %c0_7 = arith.constant 0 : index
    %7 = vector.load %arg5[%c0_6, %c0_7] : memref<16x16xf32, #tpu.memory_space<vmem>>, vector<16x16xf32>
    tpu.vector_store %arg5[%c0_6, %c0_7], %6 {strides = array<i32>} : memref<16x16xf32, #tpu.memory_space<vmem>>, vector<16x16xf32>,
    %c3_i32 = arith.constant 3 : i32
    %8 = arith.cmpi eq, %arg1, %c3_i32 : i32
    %9 = arith.extui %8 : i1 to i32
    %c0_i32_8 = arith.constant 0 : i32
    %10 = arith.cmpi ne, %9, %c0_i32_8 : i32
    scf.if %10 {
      %c0_9 = arith.constant 0 : index
      %c0_10 = arith.constant 0 : index
      %11 = vector.load %arg5[%c0_9, %c0_10] : memref<16x16xf32, #tpu.memory_space<vmem>>, vector<16x16xf32>
      %c0_11 = arith.constant 0 : index
      %c0_12 = arith.constant 0 : index
      %12 = vector.load %arg3[%c0_11, %c0_12] : memref<16x16xf32, #tpu.memory_space<vmem>>, vector<16x16xf32>
      %13 = arith.mulf %11, %12 : vector<16x16xf32>
      %c0_13 = arith.constant 0 : index
      %c0_14 = arith.constant 0 : index
      %c0_15 = arith.constant 0 : index
      %14 = vector.load %arg4[%c0_13, %c0_14, %c0_15] : memref<1x16x16xf32, #tpu.memory_space<vmem>>, vector<1x16x16xf32>
      %15 = vector.shape_cast %14 : vector<1x16x16xf32> to vector<16x16xf32>
      %16 = vector.shape_cast %13 : vector<16x16xf32> to vector<1x16x16xf32>
      tpu.vector_store %arg4[%c0_13, %c0_14, %c0_15], %16 {strides = array<i32>} : memref<1x16x16xf32, #tpu.memory_space<vmem>>, vector<1x16x16xf32>,
    } else {
    }
    return
  }
  func.func @transform_0(%arg0: i32, %arg1: i32) -> (i32, i32, i32, i32) {
    %c0_i32 = arith.constant 0 : i32
    %c0_i32_0 = arith.constant 0 : i32
    %c0_i32_1 = arith.constant 0 : i32
    return %arg0, %arg1, %c0_i32, %c0_i32_0 : i32, i32, i32, i32
  }
  func.func @transform_1(%arg0: i32, %arg1: i32) -> (i32, i32) {
    %c0_i32 = arith.constant 0 : i32
    %c0_i32_0 = arith.constant 0 : i32
    %c0_i32_1 = arith.constant 0 : i32
    return %c0_i32, %c0_i32_0 : i32, i32
  }
  func.func @transform_2(%arg0: i32, %arg1: i32) -> (i32, i32, i32) {
    %c0_i32 = arith.constant 0 : i32
    %c0_i32_0 = arith.constant 0 : i32
    %c0_i32_1 = arith.constant 0 : i32
    return %arg0, %c0_i32, %c0_i32_0 : i32, i32, i32
  }
}

</mosaic_0001>

<bundles_post_ra>
// kernel: patch2image_pallas.1
= control target key start
LH: loop header
LB: loop body
LE: loop exit
PB: predicated region body
PF: predicated region fallthrough
CT: control target
= control target key end

     0   :  { %7 = vsyncpa [#allocation4], 0  ;;  %s656_s0 = inlined_call_operand.vmem [shape: f32[2,4,16,16], index: 0, kind: input, shape index: {}]   ;;  %s657_s1 = inlined_call_operand.vmem [shape: f32[16,16], index: 1, kind: input, shape index: {}]   ;;  %s658_s2 = inlined_call_operand.hbm [shape: f32[2,16,16], index: 2, kind: output, shape index: {}]  }
   0x1   :  { %9 = vsyncpa [#allocation4 + $0x1], 0  ;;  %s498_s9 = smov 0   ;;  %s500_s10 = smov 0  }
   0x2   :  { %s502_s11 = smov 0   ;;  %s504_s12 = smov 0  }
   0x3   :  { %s506_s13 = smov 0   ;;  %s508_s14 = smov 0  }
   0x4   :  { %s510_s15 = smov 0   ;;  %s512_s16 = smov 0  }
   0x5 LB: > { %s292_s17 = sadd.s32 4294967295, %s477_s16   ;;  %s293_s18 = sadd.s32 4294967294, %s477_s16   ;;  %s477_s16 = sphi %s512_s16, %s15_s16   ;;  %s473_s15 = sphi %s510_s15, %s667_s15   ;;  %s469_s14 = sphi %s508_s14, %s666_s14   ;;  %s465_s13 = sphi %s506_s13, %s665_s13   ;;  %s461_s12 = sphi %s504_s12, %s664_s12   ;;  %s457_s11 = sphi %s502_s11, %s663_s11   ;;  %s453_s10 = sphi %s500_s10, %s662_s10   ;;  %s449_s9 = sphi %s498_s9, %s661_s9  }
   0x6   : > { %s24_s19 = sadd.s32 1, %s469_s14  ;;  %s27_s20 = sadd.s32 1, %s473_s15 }
   0x7   : > { %p25_p0 = scmp.ge.s32.totalorder %s24_s19, 4  ;;  %p93_p1 = scmp.ne.s32.totalorder %s457_s11, %s453_s10 }
   0x8   : > { %p94_p2 = scmp.eq.s32.totalorder %s292_s17, 7  ;;  %p99_p4 = scmp.ne.s32.totalorder %s453_s10, %s449_s9 }
   0x9   : > { %s669_s19 = smov (%p25_p0, %s24_s19), 0  ;;  %s671_s20 = smov (!%p25_p0, %s27_s20), %s473_s15 }
   0xa   : > { %p547_p3 = por %p94_p2, %p93_p1  ;;  %p29_p5 = scmp.ge.s32.totalorder %s671_s20, 2 }
   0xb   : > { %p100_p6 = scmp.eq.s32.totalorder %s293_s18, 7  ;;  %p296_p7 = scmp.ge.s32.totalorder %s477_s16, 1 }
   0xc   : > { %p133_p8 = scmp.lt.s32.totalorder %s477_s16, 9  ;;  %s673_s20 = smov (%p29_p5, %s671_s20), 0 }
   0xd   : > { %p557_p9 = por %p100_p6, %p99_p4  ;;  %s80_s23 = ssub.s32 %s473_s15, %s673_s20 }
   0xe   : > { %p134_p10 = pnand %p296_p7, %p133_p8  ;;  %s83_s24 = sadd.s32 1, %s457_s11 }
   0xf   : > { %p81_p11 = scmp.eq.s32.totalorder %s80_s23, 0  ;;  %s156_s26 = sand.u32 (!%p134_p10), 1, %s453_s10  }
  0x10   : > { %137 = sbr.rel (%p134_p10) target bundleno = 72 (0x48), region = 28  ;;  %p159_p12 = scmp.lt.s32.totalorder (!%p134_p10), %s465_s13, 1 }
  0x11   : > { %s565_s25 = scalar_select %p81_p11, %s457_s11, %s83_s24  }
  0x12   : > { %s297_s27 = sshll.u32 (!%p134_p10), %s156_s26, 4  ;;  %p161_p13 = scmp.lt.s32.totalorder (!%p134_p10), %s461_s12, 3 }
  0x13   : > { %s577_s17 = scalar_lea.vmem (!%p134_p10), [#allocation3], %s297_s27  ;;  %p301_p0 = scmp.ne.s32.totalorder (!%p134_p10), %s461_s12, 0 }
  0x17   : > { %s160_s28 = scalar_select %p159_p12, %s465_s13, 1 }
  0x18   : > { %s162_s29 = scalar_select %p161_p13, %s461_s12, 3 }
  0x19   : > { %s299_s30 = sshll.u32 %s160_s28, 3  ;;  %171 = sbr.rel (%p301_p0) target bundleno = 32 (0x20), region = 32  ;;  %vm172_vm0 = vcmask (!%p301_p0), 130048   ;;  %v479_v0 = vmov (!%p301_p0), 0.0  }
  0x1a   : > { %s298_s3 = sshll.u32 %s162_s29, 1  ;;  %173 = vst.msk [vmem:[#allocation2] sm:$0xff] (!%p301_p0), %vm172_vm0, %v479_v0  ;;  %174 = vst.msk [vmem:[#allocation2 + $0x8] sm:$0xff] (!%p301_p0), %vm172_vm0, %v479_v0 }
  0x1b   : > { %s165_s4 = sadd.s32 %s299_s30, %s298_s3 }
  0x1c   : > { %s300_s5 = sshll.u32 %s165_s4, 3 }
  0x1d   : > { %s167_s8 = scalar_lea.vmem %s656_s0, %s300_s5 }
  0x20 PF: > { %v177_v2 = vld [vmem:[%s167_s8] sm:$0xff]  ;;  %vm181_vm1 = vcmask 130048   ;;  %v178_v5 = vld [vmem:[%s167_s8 + $0x8] sm:$0xff]  ;;  %p302_p1 = scmp.ne.s32.totalorder %s461_s12, 3 }
  0x21   : > { %v175_v1 = vld [vmem:[#allocation2] sm:$0xff]  ;;  %v176_v3 = vld [vmem:[#allocation2 + $0x8] sm:$0xff] }
  0x22   : > { %v179_v4 = vadd.f32 %v177_v2, %v175_v1  ;;  %v180_v6 = vadd.f32 %v178_v5, %v176_v3  ;;  %187 = sbr.rel (%p302_p1) target bundleno = 47 (0x2f), region = 36  ;;  %v190_v8 = vld [vmem:[%s657_s1] sm:$0xff] (!%p302_p1)  ;;  %v191_v11 = vld [vmem:[%s657_s1 + $0x8] sm:$0xff] (!%p302_p1) }
  0x24   : > { %182 = vst.msk [vmem:[#allocation2] sm:$0xff] %vm181_vm1, %v179_v4  ;;  %183 = vst.msk [vmem:[#allocation2 + $0x8] sm:$0xff] %vm181_vm1, %v180_v6 }
  0x2b   : > { %v188_v7 = vld [vmem:[#allocation2] sm:$0xff]  ;;  %v189_v9 = vld [vmem:[#allocation2 + $0x8] sm:$0xff] }
  0x2c   : > { %v192_v10 = vmul.f32 %v190_v8, %v188_v7  ;;  %v193_v12 = vmul.f32 %v191_v11, %v189_v9 }
  0x2e   : > { %194 = vst.msk [vmem:[%s577_s17] sm:$0xff] %vm181_vm1, %v192_v10  ;;  %195 = vst.msk [vmem:[%s577_s17 + $0x8] sm:$0xff] %vm181_vm1, %v193_v12 }
  0x2f PF: > { %s308_s12 = sshll.u32 %s465_s13, 8  ;;  %s210_s3 = sshll.u32 %s577_s17, 4  ;;  %s600_s3 = int_to_ptr.vmem [resolvable:$true] %s210_s3 }
  0x30   : > { %s597_s30 = scalar_lea.hbm %s658_s2, %s308_s12  ;;  %s604_s4 = scalar_lea.sflag [#allocation4], %s156_s26 }
  0x31   : > { %s383_s5 = scalar_lea.vmem %s600_s3, 256  ;;  %s480_s13 = smov [#allocation3]  }
  0x32   : > { %p384_p2 = scmp.ne.s32.totalorder %s600_s3, %s383_s5  ;;  %s387_s6 = sshll.u32 %s480_s13, 4  ;;  %s388_s6 = int_to_ptr.vmem [resolvable:$false] %s387_s6 }
  0x33   : > { %s389_s7 = scalar_lea.vmem %s388_s6, 512  ;;  %p390_p6 = scmp.lt.s32.totalorder %s600_s3, %s388_s6 }
  0x34   : > { %p385_p4 = pnand %p384_p2, %p547_p3  ;;  %p391_p7 = scmp.lt.s32.totalorder %s389_s7, %s383_s5 }
  0x36   : > { %p386_p5 = pneg %p385_p4  ;;  %p392_p8 = por %p391_p7, %p390_p6 }
  0x38   : > { %p393_p10 = pnand %p392_p8, %p386_p5 }
  0x3a   : > { %396 = shalt.err (!%p393_p10)
}
  0x3b   : > { %s397_s26 = scalar_lea.hbm %s597_s30, 256  ;;  %s401_s18 = scalar_lea.hbm %s658_s2, 512 }
  0x3c   : > { %p398_p11 = scmp.ne.s32.totalorder %s597_s30, %s397_s26  ;;  %p402_p0 = scmp.lt.u32.totalorder %s597_s30, %s658_s2 }
  0x3d   : > { %p403_p1 = scmp.lt.u32.totalorder %s401_s18, %s397_s26  ;;  %p405_p4 = scmp.lt.u32.totalorder %s397_s26, %s597_s30 }
  0x3e   : > { %p399_p12 = pnand %p398_p11, %p547_p3 }
  0x3f   : > { %p404_p2 = por %p403_p1, %p402_p0 }
  0x40   : > { %p400_p13 = pneg %p399_p12 }
  0x41   : > { %p406_p5 = por %p405_p4, %p404_p2 }
  0x43   : > { %p407_p6 = pnand %p406_p5, %p400_p13 }
  0x45   : > { %410 = shalt.err (!%p407_p6)
}
  0x46   : > { %s481_s27 = smov 128   ;;  %s482_s12 = smov 8  }
  0x47   : > { %309 = dma.vmem_to_hbm [thread:$0]  (%p547_p3), %s600_s3, 256, %s597_s30, %s604_s4, %s481_s27, %s481_s27, %s482_s12  }
  0x48 PF: > { %p315_p7 = scmp.ge.s32.totalorder %s477_s16, 2  ;;  %s225_s28 = sand.u32 1, %s449_s9  }
  0x49   : > { %s226_s29 = scalar_lea.sflag [#allocation4], %s225_s28 }
  0x4a   : > { %p312_p8 = pnand %p315_p7, %p557_p9 }
  0x4c   : > { %444 = dma.done.wait (!%p312_p8), %s226_s29, 256  }
  0x4d   : > { %446 = vsyncadd (!%p312_p8), %s226_s29, 4294967040  ;;  %s15_s16 = sadd.s32 1, %s477_s16   ;;  %s661_s9 = smov %s453_s10 }
  0x4e   : > { %p12_p10 = scmp.ge.s32.totalorder %s15_s16, 10   ;;  %s662_s10 = smov %s457_s11 }
  0x4f   : > { %s663_s11 = smov %s565_s25  ;;  %s664_s12 = smov %s469_s14 }
  0x50   : > { %s665_s13 = smov %s473_s15  ;;  %s666_s14 = smov %s669_s19 }
  0x51   : > { %s667_s15 = smov %s673_s20  ;;  %14 = sbr.rel (!%p12_p10) target bundleno = 5 (0x5), region = 71 }
  0x58   :  { %231 = vsyncpa [#allocation4], 1 }
  0x59   :  { %233 = vsyncpa [#allocation4 + $0x1], 1 }

</bundles_post_ra>
